<compile_context>
chip_gen: v5e
topology: v5e:2x2
jax: 0.10.0
libtpu: 0.0.40
codegen_flags: <defaults>
</compile_context>

<pallas_src>
import jax
import jax.numpy as jnp
from jax import lax
from jax.experimental import pallas as pl
from jax.experimental.pallas import tpu as pltpu

_CHUNK = 512  # lane chunk for the in-kernel strip-mined |det| reduction


def _cdiv(a, b):
    return -(-a // b)


def _round_up(n, m):
    return ((n + m - 1) // m) * m


def _det_abs_rowsum(a, b, c):
    # a, b, c: (3, tb, tc) f32 planes -- xyz of the three gathered vertices.
    # Returns (tb, 1): per-batch-row sum over the lane axis of |det|.
    ax, ay, az = a[0], a[1], a[2]
    bx, by, bz = b[0], b[1], b[2]
    cx, cy, cz = c[0], c[1], c[2]
    det = (ax * (by * cz - bz * cy)
           - ay * (bx * cz - bz * cx)
           + az * (bx * cy - by * cx))
    return jnp.sum(jnp.abs(det), axis=-1, keepdims=True)


def _fused_vol_norm_kernel(a_ref, b_ref, c_ref, x_ref, o_ref, acc_ref):
    # a/b/c_ref: (3, tb, tt) gathered vertex planes (triangles on lanes)
    # x_ref:     (tb, N)     flat vertices, resident across the k axis
    # o_ref:     (tb, N)     normalized output (written at the last k step)
    # acc_ref:   (tb, 1)     running sum of |det| (VMEM scratch)
    k = pl.program_id(1)

    @pl.when(k == 0)
    def _init():
        acc_ref[...] = jnp.zeros_like(acc_ref)

    tt = a_ref.shape[-1]
    chunk = min(tt, _CHUNK)
    n_chunks = tt // chunk  # exact by construction in the wrapper

    if n_chunks == 1:
        acc_ref[...] += _det_abs_rowsum(
            a_ref[...].astype(jnp.float32),
            b_ref[...].astype(jnp.float32),
            c_ref[...].astype(jnp.float32))
    else:
        def _body(ci, acc):
            off = pl.multiple_of(ci * chunk, chunk)
            sl = pl.ds(off, chunk)
            return acc + _det_abs_rowsum(
                a_ref[:, :, sl].astype(jnp.float32),
                b_ref[:, :, sl].astype(jnp.float32),
                c_ref[:, :, sl].astype(jnp.float32))

        acc_ref[...] += lax.fori_loop(
            0, n_chunks, _body,
            jnp.zeros(acc_ref.shape, jnp.float32), unroll=True)

    @pl.when(k == pl.num_programs(1) - 1)
    def _finalize():
        vol = acc_ref[...] * (1.0 / 6.0)
        # cube root via EUP exp/log, refined with one Newton step (f32-acc).
        y = jnp.exp(jnp.log(vol) * (1.0 / 3.0))
        y = jnp.where(vol > 0.0, (2.0 * y + vol / (y * y)) * (1.0 / 3.0), y)
        # vol == 0 -> y == 0 -> inv == +inf, matching torch's divide-by-zero.
        inv = 1.0 / y                                    # (tb, 1)
        o_ref[...] = (x_ref[...].astype(jnp.float32) * inv).astype(o_ref.dtype)


@jax.jit
def volume_normalize(x, M):
    """Pallas implementation of VolumeNormalizer.forward.

    x: (B, ...) float, trailing dims flatten to V*3.   M: (T, 3) int topology.
    """
    orig_shape = x.shape
    orig_dtype = x.dtype
    B = x.shape[0]
    x3 = x.reshape(B, -1, 3)                 # keep original dtype
    V = x3.shape[1]
    N = V * 3
    T = M.shape[0]
    itemsize = jnp.dtype(orig_dtype).itemsize

    # ---------------- tile sizes -------------------------------------------
    # batch tile (sublane dim): multiple of 8 or the full B.  Prefer >= 2
    # batch tiles when B >= 16 so both v7x TensorCores get work, and grow the
    # tile for large B to amortize per-grid-step overhead.
    if B <= 8:
        tb = B          # cannot split further (sublane rule); single tile
    elif B < 16:
        tb = 8
    else:
        tb = min(32, max(8, ((B // 2) // 8) * 8))

    # triangle tile (lane dim): full T when small, else a multiple of 512
    # (up to 2048) that divides the padded triangle count.
    if T <= _CHUNK:
        tt = T
        t_pad = T
    else:
        n_chunks_total = _cdiv(T, _CHUNK)
        if n_chunks_total >= 4:
            cpt = next((c for c in (4, 3, 2) if n_chunks_total % c == 0), 1)
        else:
            cpt = n_chunks_total
        tt = cpt * _CHUNK
        t_pad = _round_up(T, tt)

    # Budget the working set well under v7x's 64 MiB physical VMEM.
    def _vmem_bytes(tb_, tt_):
        tri = 3 * (3 * tb_ * tt_ * itemsize) * 2   # 3 inputs, double-buffered
        xio = 2 * (tb_ * N * itemsize) * 2         # x in + out, double-buffered
        return tri + xio

    vmem_budget = 40 * 1024 * 1024
    while tb > 8 and _vmem_bytes(tb, tt) > vmem_budget:
        tb -= 8
    if tt > _CHUNK and _vmem_bytes(tb, tt) > vmem_budget:
        tt = _CHUNK
        t_pad = _round_up(T, tt)

    # Pad only the tiny int topology with degenerate (0,0,0) triangles whose
    # det is exactly 0; no zero-padding of the big float tensors.
    M32 = M.astype(jnp.int32)
    if t_pad != T:
        M32 = jnp.concatenate(
            [M32, jnp.zeros((t_pad - T, 3), jnp.int32)], axis=0)

    # Triangle-vertex gather (torch x[:, M]) produced directly in the
    # kernel's plane-major (3, B, t_pad) layout: transpose only the small x
    # tensor, then one gather per vertex slot -> no transpose of the big
    # gathered tensor.
    # TODO(synk): fuse this gather into the kernel to remove its write+read.
    xt = jnp.transpose(x3, (2, 0, 1))                  # (3, B, V) -- tiny
    tri_a = jnp.take(xt, M32[:, 0], axis=2)            # (3, B, t_pad)
    tri_b = jnp.take(xt, M32[:, 1], axis=2)
    tri_c = jnp.take(xt, M32[:, 2], axis=2)

    xf = x3.reshape(B, N)

    nb = _cdiv(B, tb)
    nt = t_pad // tt

    out = pl.pallas_call(
        _fused_vol_norm_kernel,
        out_shape=jax.ShapeDtypeStruct((B, N), orig_dtype),
        grid=(nb, nt),
        in_specs=[
            pl.BlockSpec((3, tb, tt), lambda i, k: (0, i, k)),
            pl.BlockSpec((3, tb, tt), lambda i, k: (0, i, k)),
            pl.BlockSpec((3, tb, tt), lambda i, k: (0, i, k)),
            pl.BlockSpec((tb, N), lambda i, k: (i, 0)),   # resident across k
        ],
        out_specs=pl.BlockSpec((tb, N), lambda i, k: (i, 0)),
        scratch_shapes=[pltpu.VMEM((tb, 1), jnp.float32)],
        compiler_params=pltpu.CompilerParams(
            dimension_semantics=("parallel", "arbitrary"),
            vmem_limit_bytes=48 * 1024 * 1024),
    )(tri_a, tri_b, tri_c, xf)

    return out.reshape(orig_shape)


def _reference(x, M):
    """Pure-JAX reference mirroring the torch code."""
    orig_shape = x.shape
    B = x.shape[0]
    x3 = x.reshape(B, -1, 3).astype(jnp.float32)
    Q = jnp.take(x3, M, axis=1)                             # (B, T, 3, 3)
    det = jnp.linalg.det(Q)                                 # (B, T)
    scale = (jnp.sum(jnp.abs(det), axis=1) / 6.0) ** (1.0 / 3.0)
    out = x3 / scale[:, None, None]
    return out.reshape(orig_shape).astype(x.dtype)


if __name__ == "__main__":
    key = jax.random.PRNGKey(0)
    k_x, k_m, k_x2, k_m2 = jax.random.split(key, 4)

    # --- small demo shapes (blocks == full arrays; single grid step) ---
    B, V, T = 2, 16, 8
    x = jax.random.normal(k_x, (B, V, 3), dtype=jnp.float32)
    M = jax.random.randint(k_m, (T, 3), 0, V, dtype=jnp.int32)

    out = jax.block_until_ready(volume_normalize(x, M))
    ref = _reference(x, M)
    assert out.shape == x.shape and out.dtype == x.dtype
    assert jnp.allclose(out, ref, rtol=1e-5, atol=1e-5), (
        f"max err {jnp.max(jnp.abs(out - ref))}"
    )

    # --- larger case exercising batch tiling, padded topology, chunk loop ---
    B2, V2, T2 = 16, 300, 600
    x2 = jax.random.normal(k_x2, (B2, V2, 3), dtype=jnp.float32)
    M2 = jax.random.randint(k_m2, (T2, 3), 0, V2, dtype=jnp.int32)

    out2 = jax.block_until_ready(volume_normalize(x2, M2))
    ref2 = _reference(x2, M2)
    assert out2.shape == x2.shape and out2.dtype == x2.dtype
    assert jnp.allclose(out2, ref2, rtol=1e-5, atol=1e-5), (
        f"max err {jnp.max(jnp.abs(out2 - ref2))}"
    )

    print("KERNEL_OK")
</pallas_src>

<mosaic_0001>
module attributes {stable_mosaic.version = 11 : i64} {
  func.func @_fused_vol_norm_kernel(%arg0: i32, %arg1: i32, %arg2: memref<3x2x8xf32, #tpu.memory_space<vmem>>, %arg3: memref<3x2x8xf32, #tpu.memory_space<vmem>>, %arg4: memref<3x2x8xf32, #tpu.memory_space<vmem>>, %arg5: memref<2x48xf32, #tpu.memory_space<vmem>>, %arg6: memref<2x48xf32, #tpu.memory_space<vmem>>, %arg7: memref<2x1xf32, #tpu.memory_space<vmem>>) attributes {dimension_semantics = [#tpu.dimension_semantics<parallel>, #tpu.dimension_semantics<arbitrary>], iteration_bounds = array<i64: 1, 1>, scalar_prefetch = 0 : i64, scratch_operands = 1 : i64, tpu.core_type = #tpu.core_type<tc>, window_params = [{transform_indices = @transform_0, window_bounds = array<i64: 3, 2, 8>}, {transform_indices = @transform_1, window_bounds = array<i64: 3, 2, 8>}, {transform_indices = @transform_2, window_bounds = array<i64: 3, 2, 8>}, {transform_indices = @transform_3, window_bounds = array<i64: 2, 48>}, {transform_indices = @transform_4, window_bounds = array<i64: 2, 48>}]} {
    %c0_i32 = arith.constant 0 : i32
    %0 = arith.cmpi eq, %arg1, %c0_i32 : i32
    %1 = arith.extui %0 : i1 to i32
    %c0_i32_0 = arith.constant 0 : i32
    %2 = arith.cmpi ne, %1, %c0_i32_0 : i32
    scf.if %2 {
      %cst_15 = arith.constant 0.000000e+00 : f32
      %47 = vector.broadcast %cst_15 : f32 to vector<2x1xf32>
      %c0_16 = arith.constant 0 : index
      %c0_17 = arith.constant 0 : index
      %48 = vector.load %arg7[%c0_16, %c0_17] : memref<2x1xf32, #tpu.memory_space<vmem>>, vector<2x1xf32>
      tpu.vector_store %arg7[%c0_16, %c0_17], %47 {strides = array<i32>} : memref<2x1xf32, #tpu.memory_space<vmem>>, vector<2x1xf32>,
    } else {
    }
    %c0 = arith.constant 0 : index
    %c0_1 = arith.constant 0 : index
    %3 = vector.load %arg7[%c0, %c0_1] : memref<2x1xf32, #tpu.memory_space<vmem>>, vector<2x1xf32>
    %c0_2 = arith.constant 0 : index
    %c0_3 = arith.constant 0 : index
    %c0_4 = arith.constant 0 : index
    %4 = vector.load %arg2[%c0_2, %c0_3, %c0_4] : memref<3x2x8xf32, #tpu.memory_space<vmem>>, vector<3x2x8xf32>
    %c0_5 = arith.constant 0 : index
    %c0_6 = arith.constant 0 : index
    %c0_7 = arith.constant 0 : index
    %5 = vector.load %arg3[%c0_5, %c0_6, %c0_7] : memref<3x2x8xf32, #tpu.memory_space<vmem>>, vector<3x2x8xf32>
    %c0_8 = arith.constant 0 : index
    %c0_9 = arith.constant 0 : index
    %c0_10 = arith.constant 0 : index
    %6 = vector.load %arg4[%c0_8, %c0_9, %c0_10] : memref<3x2x8xf32, #tpu.memory_space<vmem>>, vector<3x2x8xf32>
    %7 = vector.extract_strided_slice %4 {offsets = [0, 0, 0], sizes = [1, 2, 8], strides = [1, 1, 1]} : vector<3x2x8xf32> to vector<1x2x8xf32>
    %8 = vector.shape_cast %7 : vector<1x2x8xf32> to vector<2x8xf32>
    %9 = vector.extract_strided_slice %4 {offsets = [1, 0, 0], sizes = [1, 2, 8], strides = [1, 1, 1]} : vector<3x2x8xf32> to vector<1x2x8xf32>
    %10 = vector.shape_cast %9 : vector<1x2x8xf32> to vector<2x8xf32>
    %11 = vector.extract_strided_slice %4 {offsets = [2, 0, 0], sizes = [1, 2, 8], strides = [1, 1, 1]} : vector<3x2x8xf32> to vector<1x2x8xf32>
    %12 = vector.shape_cast %11 : vector<1x2x8xf32> to vector<2x8xf32>
    %13 = vector.extract_strided_slice %5 {offsets = [0, 0, 0], sizes = [1, 2, 8], strides = [1, 1, 1]} : vector<3x2x8xf32> to vector<1x2x8xf32>
    %14 = vector.shape_cast %13 : vector<1x2x8xf32> to vector<2x8xf32>
    %15 = vector.extract_strided_slice %5 {offsets = [1, 0, 0], sizes = [1, 2, 8], strides = [1, 1, 1]} : vector<3x2x8xf32> to vector<1x2x8xf32>
    %16 = vector.shape_cast %15 : vector<1x2x8xf32> to vector<2x8xf32>
    %17 = vector.extract_strided_slice %5 {offsets = [2, 0, 0], sizes = [1, 2, 8], strides = [1, 1, 1]} : vector<3x2x8xf32> to vector<1x2x8xf32>
    %18 = vector.shape_cast %17 : vector<1x2x8xf32> to vector<2x8xf32>
    %19 = vector.extract_strided_slice %6 {offsets = [0, 0, 0], sizes = [1, 2, 8], strides = [1, 1, 1]} : vector<3x2x8xf32> to vector<1x2x8xf32>
    %20 = vector.shape_cast %19 : vector<1x2x8xf32> to vector<2x8xf32>
    %21 = vector.extract_strided_slice %6 {offsets = [1, 0, 0], sizes = [1, 2, 8], strides = [1, 1, 1]} : vector<3x2x8xf32> to vector<1x2x8xf32>
    %22 = vector.shape_cast %21 : vector<1x2x8xf32> to vector<2x8xf32>
    %23 = vector.extract_strided_slice %6 {offsets = [2, 0, 0], sizes = [1, 2, 8], strides = [1, 1, 1]} : vector<3x2x8xf32> to vector<1x2x8xf32>
    %24 = vector.shape_cast %23 : vector<1x2x8xf32> to vector<2x8xf32>
    %25 = arith.mulf %16, %24 : vector<2x8xf32>
    %26 = arith.mulf %18, %22 : vector<2x8xf32>
    %27 = arith.subf %25, %26 : vector<2x8xf32>
    %28 = arith.mulf %8, %27 : vector<2x8xf32>
    %29 = arith.mulf %14, %24 : vector<2x8xf32>
    %30 = arith.mulf %18, %20 : vector<2x8xf32>
    %31 = arith.subf %29, %30 : vector<2x8xf32>
    %32 = arith.mulf %10, %31 : vector<2x8xf32>
    %33 = arith.subf %28, %32 : vector<2x8xf32>
    %34 = arith.mulf %14, %22 : vector<2x8xf32>
    %35 = arith.mulf %16, %20 : vector<2x8xf32>
    %36 = arith.subf %34, %35 : vector<2x8xf32>
    %37 = arith.mulf %12, %36 : vector<2x8xf32>
    %38 = arith.addf %33, %37 : vector<2x8xf32>
    %39 = math.absf %38 : vector<2x8xf32>
    %cst = arith.constant dense<0.000000e+00> : vector<2xf32>
    %40 = vector.multi_reduction <add>, %39, %cst [1] : vector<2x8xf32> to vector<2xf32>
    %41 = vector.shape_cast %40 : vector<2xf32> to vector<2x1xf32>
    %42 = arith.addf %3, %41 : vector<2x1xf32>
    %c0_11 = arith.constant 0 : index
    %c0_12 = arith.constant 0 : index
    %43 = vector.load %arg7[%c0_11, %c0_12] : memref<2x1xf32, #tpu.memory_space<vmem>>, vector<2x1xf32>
    tpu.vector_store %arg7[%c0_11, %c0_12], %42 {strides = array<i32>} : memref<2x1xf32, #tpu.memory_space<vmem>>, vector<2x1xf32>,
    %c0_i32_13 = arith.constant 0 : i32
    %44 = arith.cmpi eq, %arg1, %c0_i32_13 : i32
    %45 = arith.extui %44 : i1 to i32
    %c0_i32_14 = arith.constant 0 : i32
    %46 = arith.cmpi ne, %45, %c0_i32_14 : i32
    scf.if %46 {
      %c0_15 = arith.constant 0 : index
      %c0_16 = arith.constant 0 : index
      %47 = vector.load %arg7[%c0_15, %c0_16] : memref<2x1xf32, #tpu.memory_space<vmem>>, vector<2x1xf32>
      %cst_17 = arith.constant 0.166666672 : f32
      %48 = vector.broadcast %cst_17 : f32 to vector<2x1xf32>
      %49 = arith.mulf %47, %48 : vector<2x1xf32>
      %50 = math.log %49 : vector<2x1xf32>
      %cst_18 = arith.constant 0.333333343 : f32
      %51 = vector.broadcast %cst_18 : f32 to vector<2x1xf32>
      %52 = arith.mulf %50, %51 : vector<2x1xf32>
      %53 = math.exp %52 : vector<2x1xf32>
      %cst_19 = arith.constant 0.000000e+00 : f32
      %54 = vector.broadcast %cst_19 : f32 to vector<2x1xf32>
      %55 = arith.cmpf ogt, %49, %54 : vector<2x1xf32>
      %cst_20 = arith.constant 2.000000e+00 : f32
      %56 = vector.broadcast %cst_20 : f32 to vector<2x1xf32>
      %57 = arith.mulf %56, %53 : vector<2x1xf32>
      %58 = arith.mulf %53, %53 : vector<2x1xf32>
      %59 = arith.divf %49, %58 : vector<2x1xf32>
      %60 = arith.addf %57, %59 : vector<2x1xf32>
      %cst_21 = arith.constant 0.333333343 : f32
      %61 = vector.broadcast %cst_21 : f32 to vector<2x1xf32>
      %62 = arith.mulf %60, %61 : vector<2x1xf32>
      %63 = arith.select %55, %62, %53 : vector<2x1xi1>, vector<2x1xf32>
      %cst_22 = arith.constant 1.000000e+00 : f32
      %64 = vector.broadcast %cst_22 : f32 to vector<2x1xf32>
      %65 = arith.divf %64, %63 : vector<2x1xf32>
      %c0_23 = arith.constant 0 : index
      %c0_24 = arith.constant 0 : index
      %66 = vector.load %arg5[%c0_23, %c0_24] : memref<2x48xf32, #tpu.memory_space<vmem>>, vector<2x48xf32>
      %67 = vector.broadcast %65 : vector<2x1xf32> to vector<2x48xf32>
      %68 = arith.mulf %66, %67 : vector<2x48xf32>
      %c0_25 = arith.constant 0 : index
      %c0_26 = arith.constant 0 : index
      %69 = vector.load %arg6[%c0_25, %c0_26] : memref<2x48xf32, #tpu.memory_space<vmem>>, vector<2x48xf32>
      tpu.vector_store %arg6[%c0_25, %c0_26], %68 {strides = array<i32>} : memref<2x48xf32, #tpu.memory_space<vmem>>, vector<2x48xf32>,
    } else {
    }
    return
  }
  func.func @transform_0(%arg0: i32, %arg1: i32) -> (i32, i32, i32) {
    %c0_i32 = arith.constant 0 : i32
    %c0_i32_0 = arith.constant 0 : i32
    return %c0_i32, %arg0, %arg1 : i32, i32, i32
  }
  func.func @transform_1(%arg0: i32, %arg1: i32) -> (i32, i32, i32) {
    %c0_i32 = arith.constant 0 : i32
    %c0_i32_0 = arith.constant 0 : i32
    return %c0_i32, %arg0, %arg1 : i32, i32, i32
  }
  func.func @transform_2(%arg0: i32, %arg1: i32) -> (i32, i32, i32) {
    %c0_i32 = arith.constant 0 : i32
    %c0_i32_0 = arith.constant 0 : i32
    return %c0_i32, %arg0, %arg1 : i32, i32, i32
  }
  func.func @transform_3(%arg0: i32, %arg1: i32) -> (i32, i32) {
    %c0_i32 = arith.constant 0 : i32
    %c0_i32_0 = arith.constant 0 : i32
    return %arg0, %c0_i32 : i32, i32
  }
  func.func @transform_4(%arg0: i32, %arg1: i32) -> (i32, i32) {
    %c0_i32 = arith.constant 0 : i32
    %c0_i32_0 = arith.constant 0 : i32
    return %arg0, %c0_i32 : i32, i32
  }
}

</mosaic_0001>

<bundles_post_ra>
// kernel: volume_normalize.1
= control target key start
LH: loop header
LB: loop body
LE: loop exit
PB: predicated region body
PF: predicated region fallthrough
CT: control target
= control target key end

     0   :  { %vm21_vm0 = vcmask 1024   ;;  %v125_v10 = vmov 0.0   ;;  %vm48_vm1 = vcmask 58368   ;;  %v126_v26 = vmov 0   ;;  %s187_s1 = inlined_call_operand.vmem [shape: f32[3,2,8], index: 1, kind: input, shape index: {}]   ;;  %s188_s2 = inlined_call_operand.vmem [shape: f32[3,2,8], index: 2, kind: input, shape index: {}]   ;;  %s189_s0 = inlined_call_operand.vmem [shape: f32[3,2,8], index: 0, kind: input, shape index: {}]   ;;  %s190_s3 = inlined_call_operand.vmem [shape: f32[2,48], index: 3, kind: input, shape index: {}]   ;;  %s191_s4 = inlined_call_operand.vmem [shape: f32[2,48], index: 4, kind: output, shape index: {}]  }
   0x1   :  { %v27_v0 = vld [vmem:[%s187_s1] sm:$0x3]  ;;  %v28_v1 = vld [vmem:[%s187_s1 + $0x2] sm:$0x3]  ;;  %v29_v2 = vld [vmem:[%s187_s1 + $0x4] sm:$0x3]  ;;  %116 = vset.pattern.permute.xlu0 %v126_v26 }
   0x2   :  { %v30_v3 = vld [vmem:[%s188_s2] sm:$0x3]  ;;  %v31_v4 = vld [vmem:[%s188_s2 + $0x2] sm:$0x3]  ;;  %v32_v5 = vld [vmem:[%s188_s2 + $0x4] sm:$0x3] }
   0x3   :  { %v33_v6 = vmul.f32 %v32_v5, %v28_v1  ;;  %v34_v7 = vmul.f32 %v31_v4, %v29_v2  ;;  %v37_v8 = vmul.f32 %v32_v5, %v27_v0  ;;  %v38_v9 = vmul.f32 %v30_v3, %v29_v2  ;;  %22 = vst.msk [vmem:[#allocation2] sm:$0x3] %vm21_vm0, %v125_v10  ;;  %v24_v11 = vld [vmem:[%s189_s0] sm:$0x3]  ;;  %v25_v12 = vld [vmem:[%s189_s0 + $0x2] sm:$0x3] }
   0x4   :  { %v42_v13 = vmul.f32 %v31_v4, %v27_v0  ;;  %v43_v14 = vmul.f32 %v30_v3, %v28_v1  ;;  %v26_v15 = vld [vmem:[%s189_s0 + $0x4] sm:$0x3]  ;;  %v101_v63 = vld [vmem:[%s190_s3] sm:$0x3]  ;;  %vm108_vm11 = vcmask 386048  }
   0x5   :  { %v35_v16 = vsub.f32 %v33_v6, %v34_v7  ;;  %v39_v17 = vsub.f32 %v37_v8, %v38_v9 }
   0x6   :  { %v44_v18 = vsub.f32 %v42_v13, %v43_v14 }
   0x7   :  { %v36_v19 = vmul.f32 %v35_v16, %v24_v11  ;;  %v40_v20 = vmul.f32 %v39_v17, %v25_v12 }
   0x8   :  { %v45_v21 = vmul.f32 %v44_v18, %v26_v15 }
   0x9   :  { %v41_v22 = vsub.f32 %v36_v19, %v40_v20 }
   0xa   :  { %v23_v27 = vld [vmem:[#allocation2] sm:$0x3] }
   0xb   :  { %v46_v23 = vadd.f32 %v45_v21, %v41_v22 }
   0xd   :  { %v47_v24 = vand.u32 2147483647, %v46_v23 }
   0xf   :  { %v49_v25 = vsel %vm48_vm1, %v47_v24, 0.0 }
  0x10   :  { %50 = vadd.xlane.f32.xlu0 %v49_v25 }
  0x83   :  { %v51_v28 = vpop.xlane.xlu0 %50 }
  0x84   :  { %v52_v29 = vadd.f32 %v51_v28, %v23_v27 }
  0x86   :  { %54 = vst.msk [vmem:[#allocation2] sm:$0x3] %vm21_vm0, %v52_v29 }
  0x8d   :  { %v58_v30 = vld [vmem:[#allocation2] sm:$0x3] }
  0x8e   :  { %v59_v31 = vmul.f32 0.16666667, %v58_v30 }
  0x90   :  { %117 = vlog2.f32 %v59_v31  ;;  %vm65_vm6 = vcmp.gt.f32.partialorder %v59_v31, 0.0 }
  0x96   :  { %v118_v32 = vpop.eup %117 }
  0x97   :  { %v61_v33 = vmul.f32 0.6931472, %v118_v32 }
  0x99   :  { %v62_v34 = vmul.f32 0.33333334, %v61_v33 }
  0x9b   :  { %v63_v35 = vmul.f32 1.442695, %v62_v34 }
  0x9d   :  { %119 = vpow2.f32 %v63_v35 }
  0xa3   :  { %v120_v36 = vpop.eup %119 }
  0xa4   :  { %v67_v37 = vmul.f32 %v120_v36, %v120_v36  ;;  %v66_v48 = vmul.f32 2.0, %v120_v36 }
  0xa6   :  { %121 = vrcp.f32 %v67_v37  ;;  %v79_v41 = vand.u32 2147483648, %v67_v37  ;;  %v77_v43 = vand.u32 2147483647, %v67_v37  ;;  %vm73_vm3 = vweird.f32 %v67_v37 }
  0xa8   :  { %v80_v45 = vor.u32 1.1754944e-38, %v79_v41  ;;  %vm78_vm5 = vcmp.eq.f32.partialorder %v77_v43, 8.507059e+37 }
  0xac   :  { %v122_v38 = vpop.eup %121 }
  0xad   :  { %v69_v39 = vmul.f32 %v122_v38, %v67_v37  ;;  %vm74_vm2 = vweird.f32 %v122_v38 }
  0xae   :  { %vm75_vm4 = vmor %vm73_vm3, %vm74_vm2 }
  0xaf   :  { %v70_v40 = vsub.f32 1.0, %v69_v39 }
  0xb1   :  { %v71_v42 = vmul.f32 %v122_v38, %v70_v40 }
  0xb3   :  { %v72_v44 = vadd.f32 %v122_v38, %v71_v42 }
  0xb5   :  { %v76_v46 = vsel %vm75_vm4, %v122_v38, %v72_v44 }
  0xb6   :  { %v81_v47 = vsel %vm78_vm5, %v80_v45, %v76_v46 }
  0xb7   :  { %v82_v49 = vmul.f32 %v81_v47, %v59_v31 }
  0xb9   :  { %v83_v50 = vadd.f32 %v82_v49, %v66_v48 }
  0xbb   :  { %v84_v51 = vmul.f32 0.33333334, %v83_v50 }
  0xbd   :  { %v85_v52 = vsel %vm65_vm6, %v84_v51, %v120_v36 }
  0xbe   :  { %123 = vrcp.f32 %v85_v52  ;;  %v97_v56 = vand.u32 2147483648, %v85_v52  ;;  %v95_v58 = vand.u32 2147483647, %v85_v52  ;;  %vm91_vm8 = vweird.f32 %v85_v52 }
  0xc0   :  { %v98_v60 = vor.u32 1.1754944e-38, %v97_v56  ;;  %vm96_vm10 = vcmp.eq.f32.partialorder %v95_v58, 8.507059e+37 }
  0xc4   :  { %v124_v53 = vpop.eup %123 }
  0xc5   :  { %v87_v54 = vmul.f32 %v124_v53, %v85_v52  ;;  %vm92_vm7 = vweird.f32 %v124_v53 }
  0xc6   :  { %vm93_vm9 = vmor %vm91_vm8, %vm92_vm7 }
  0xc7   :  { %v88_v55 = vsub.f32 1.0, %v87_v54 }
  0xc9   :  { %v89_v57 = vmul.f32 %v124_v53, %v88_v55 }
  0xcb   :  { %v90_v59 = vadd.f32 %v124_v53, %v89_v57 }
  0xcd   :  { %v94_v61 = vsel %vm93_vm9, %v124_v53, %v90_v59 }
  0xce   :  { %v99_v62 = vsel %vm96_vm10, %v98_v60, %v94_v61 }
  0xcf   :  { %104 = vperm.xlu0 %116, %v99_v62  }
 0x141   :  { %v105_v0 = vpop.permute.xlu0 %104 }
 0x142   :  { %v107_v1 = vmul.f32 %v105_v0, %v101_v63 }
 0x144   :  { %109 = vst.msk [vmem:[%s191_s4] sm:$0x3] %vm108_vm11, %v107_v1 }

</bundles_post_ra>
